<compile_context>
chip_gen: v5e
topology: v5e:2x2
jax: 0.10.0
libtpu: 0.0.40
codegen_flags: <defaults>
</compile_context>

<pallas_src>
import jax
import jax.numpy as jnp
from jax.experimental import pallas as pl
from jax.experimental.pallas import tpu as pltpu


def _softplus(x):
    # numerically-stable log(1 + exp(x)) (matches F.softplus default)
    return jnp.maximum(x, 0.0) + jnp.log1p(jnp.exp(-jnp.abs(x)))


def bit_estimator_kernel(x_ref, p_ref, o_ref):
    # x_ref: (TILE_R, TILE_L)
    # p_ref: (TILE_R, 11) packed per-row params:
    #   [sp_h1, b1, ta1, sp_h2, b2, ta2, sp_h3, b3, ta3, sp_h4, b4]
    x = x_ref[...].astype(jnp.float32)
    p = p_ref[...].astype(jnp.float32)

    # f1, f2, f3: y = x*softplus(h) + b ; x = y + tanh(y)*tanh(a)
    # (softplus(h) and tanh(a) are precomputed in the wrapper)
    for i in range(3):
        sp_h = p[:, 3 * i + 0: 3 * i + 1]   # (TILE_R, 1)
        b    = p[:, 3 * i + 1: 3 * i + 2]   # (TILE_R, 1)
        ta   = p[:, 3 * i + 2: 3 * i + 3]   # (TILE_R, 1)
        y = x * sp_h + b
        x = y + jnp.tanh(y) * ta

    # f4 (final): sigmoid(x*softplus(h) + b)
    sp_h4 = p[:, 9:10]
    b4    = p[:, 10:11]
    o_ref[...] = jax.nn.sigmoid(x * sp_h4 + b4).astype(o_ref.dtype)


def _round_up(v, m):
    return (v + m - 1) // m * m


def bit_estimator(x_nchw, params, *, max_tile_r=256, max_tile_l=1024):
    """x_nchw: (N, C, H, W) float32.  params: dict of per-layer (C,) vectors."""
    N, C, H, W = x_nchw.shape
    R, HW = N * C, H * W
    x2d = x_nchw.reshape(R, HW).astype(jnp.float32)

    # ---- tile selection (lane-dense, multiple of (8, 128)) -----------------
    TILE_L = min(max_tile_l, _round_up(HW, 128))
    TILE_R = min(max_tile_r, _round_up(R, 8))
    R_pad = _round_up(R, TILE_R)
    L_pad = _round_up(HW, TILE_L)
    if (R_pad, L_pad) != (R, HW):
        x2d = jnp.pad(x2d, ((0, R_pad - R), (0, L_pad - HW)))

    # ---- pack per-row params (row index = n*C + c), precompute transcendentals
    def per_row(v_c):  # (C,) -> (R_pad,)
        t = jnp.tile(v_c, (N,))
        return jnp.pad(t, (0, R_pad - R))

    cols = []
    for layer in (1, 2, 3):
        cols.append(per_row(_softplus(params[f"h{layer}"])))
        cols.append(per_row(params[f"b{layer}"]))
        cols.append(per_row(jnp.tanh(params[f"a{layer}"])))
    cols.append(per_row(_softplus(params["h4"])))
    cols.append(per_row(params["b4"]))
    p_packed = jnp.stack(cols, axis=1).astype(jnp.float32)  # (R_pad, 11)
    NP = p_packed.shape[1]

    grid = (R_pad // TILE_R, L_pad // TILE_L)

    out2d = pl.pallas_call(
        bit_estimator_kernel,
        out_shape=jax.ShapeDtypeStruct((R_pad, L_pad), x_nchw.dtype),
        grid_spec=pltpu.PrefetchScalarGridSpec(
            num_scalar_prefetch=0,
            grid=grid,
            in_specs=[
                pl.BlockSpec((TILE_R, TILE_L), lambda i, j: (i, j)),  # x tile
                pl.BlockSpec((TILE_R, NP),     lambda i, j: (i, 0)),  # packed params
            ],
            out_specs=pl.BlockSpec((TILE_R, TILE_L), lambda i, j: (i, j)),
        ),
        compiler_params=pltpu.CompilerParams(
            dimension_semantics=("parallel", "parallel"),
            vmem_limit_bytes=32 * 1024 * 1024,
        ),
        cost_estimate=pl.CostEstimate(
            flops=14 * R_pad * L_pad,
            transcendentals=4 * R_pad * L_pad,
            bytes_accessed=8 * R_pad * L_pad + 4 * R_pad * NP,
        ),
    )(x2d, p_packed)

    return out2d[:R, :HW].reshape(N, C, H, W)


def _reference(x, params):
    """Pure-JAX reference mirroring the PyTorch module (NCHW broadcasting)."""
    def bitparm(x, h, b, a=None, final=False):
        h = h.reshape(1, -1, 1, 1)
        b = b.reshape(1, -1, 1, 1)
        if final:
            return jax.nn.sigmoid(x * _softplus(h) + b)
        a = a.reshape(1, -1, 1, 1)
        y = x * _softplus(h) + b
        return y + jnp.tanh(y) * jnp.tanh(a)

    x = bitparm(x, params["h1"], params["b1"], params["a1"])
    x = bitparm(x, params["h2"], params["b2"], params["a2"])
    x = bitparm(x, params["h3"], params["b3"], params["a3"])
    return bitparm(x, params["h4"], params["b4"], final=True)


if __name__ == "__main__":
    N, C, H, W = 2, 4, 16, 16
    key = jax.random.PRNGKey(0)
    keys = jax.random.split(key, 12)

    x = jax.random.normal(keys[0], (N, C, H, W), dtype=jnp.float32)

    # Deterministic parameter init: normal(0, 0.01), one (C,) vector per param
    # (matches torch.nn.init.normal_(torch.empty(channel), 0, 0.01)).
    params = {}
    k_idx = 1
    for layer in (1, 2, 3):
        for name in ("h", "b", "a"):
            params[f"{name}{layer}"] = 0.01 * jax.random.normal(
                keys[k_idx], (C,), dtype=jnp.float32)
            k_idx += 1
    params["h4"] = 0.01 * jax.random.normal(keys[k_idx], (C,), dtype=jnp.float32)
    params["b4"] = 0.01 * jax.random.normal(keys[k_idx + 1], (C,), dtype=jnp.float32)

    out = bit_estimator(x, params)
    out = jax.block_until_ready(out)

    ref = _reference(x, params)
    assert out.shape == (N, C, H, W)
    assert jnp.allclose(out, ref, atol=1e-5, rtol=1e-5), "mismatch vs reference"

    print("KERNEL_OK")
</pallas_src>

<mosaic_0001>
module attributes {stable_mosaic.version = 11 : i64} {
  func.func @bit_estimator_kernel(%arg0: i32, %arg1: i32, %arg2: memref<8x256xf32, #tpu.memory_space<vmem>>, %arg3: memref<8x11xf32, #tpu.memory_space<vmem>>, %arg4: memref<8x256xf32, #tpu.memory_space<vmem>>) attributes {dimension_semantics = [#tpu.dimension_semantics<parallel>, #tpu.dimension_semantics<parallel>], iteration_bounds = array<i64: 1, 1>, scalar_prefetch = 0 : i64, scratch_operands = 0 : i64, tpu.core_type = #tpu.core_type<tc>, window_params = [{transform_indices = @transform_0, window_bounds = array<i64: 8, 256>}, {transform_indices = @transform_1, window_bounds = array<i64: 8, 11>}, {transform_indices = @transform_2, window_bounds = array<i64: 8, 256>}]} {
    %c0 = arith.constant 0 : index
    %c0_0 = arith.constant 0 : index
    %0 = vector.load %arg2[%c0, %c0_0] : memref<8x256xf32, #tpu.memory_space<vmem>>, vector<8x256xf32>
    %c0_1 = arith.constant 0 : index
    %c0_2 = arith.constant 0 : index
    %1 = vector.load %arg3[%c0_1, %c0_2] : memref<8x11xf32, #tpu.memory_space<vmem>>, vector<8x11xf32>
    %2 = vector.extract_strided_slice %1 {offsets = [0, 0], sizes = [8, 1], strides = [1, 1]} : vector<8x11xf32> to vector<8x1xf32>
    %3 = vector.extract_strided_slice %1 {offsets = [0, 1], sizes = [8, 1], strides = [1, 1]} : vector<8x11xf32> to vector<8x1xf32>
    %4 = vector.extract_strided_slice %1 {offsets = [0, 2], sizes = [8, 1], strides = [1, 1]} : vector<8x11xf32> to vector<8x1xf32>
    %5 = vector.broadcast %2 : vector<8x1xf32> to vector<8x256xf32>
    %6 = arith.mulf %0, %5 : vector<8x256xf32>
    %7 = vector.broadcast %3 : vector<8x1xf32> to vector<8x256xf32>
    %8 = arith.addf %6, %7 : vector<8x256xf32>
    %9 = math.tanh %8 : vector<8x256xf32>
    %10 = vector.broadcast %4 : vector<8x1xf32> to vector<8x256xf32>
    %11 = arith.mulf %9, %10 : vector<8x256xf32>
    %12 = arith.addf %8, %11 : vector<8x256xf32>
    %13 = vector.extract_strided_slice %1 {offsets = [0, 3], sizes = [8, 1], strides = [1, 1]} : vector<8x11xf32> to vector<8x1xf32>
    %14 = vector.extract_strided_slice %1 {offsets = [0, 4], sizes = [8, 1], strides = [1, 1]} : vector<8x11xf32> to vector<8x1xf32>
    %15 = vector.extract_strided_slice %1 {offsets = [0, 5], sizes = [8, 1], strides = [1, 1]} : vector<8x11xf32> to vector<8x1xf32>
    %16 = vector.broadcast %13 : vector<8x1xf32> to vector<8x256xf32>
    %17 = arith.mulf %12, %16 : vector<8x256xf32>
    %18 = vector.broadcast %14 : vector<8x1xf32> to vector<8x256xf32>
    %19 = arith.addf %17, %18 : vector<8x256xf32>
    %20 = math.tanh %19 : vector<8x256xf32>
    %21 = vector.broadcast %15 : vector<8x1xf32> to vector<8x256xf32>
    %22 = arith.mulf %20, %21 : vector<8x256xf32>
    %23 = arith.addf %19, %22 : vector<8x256xf32>
    %24 = vector.extract_strided_slice %1 {offsets = [0, 6], sizes = [8, 1], strides = [1, 1]} : vector<8x11xf32> to vector<8x1xf32>
    %25 = vector.extract_strided_slice %1 {offsets = [0, 7], sizes = [8, 1], strides = [1, 1]} : vector<8x11xf32> to vector<8x1xf32>
    %26 = vector.extract_strided_slice %1 {offsets = [0, 8], sizes = [8, 1], strides = [1, 1]} : vector<8x11xf32> to vector<8x1xf32>
    %27 = vector.broadcast %24 : vector<8x1xf32> to vector<8x256xf32>
    %28 = arith.mulf %23, %27 : vector<8x256xf32>
    %29 = vector.broadcast %25 : vector<8x1xf32> to vector<8x256xf32>
    %30 = arith.addf %28, %29 : vector<8x256xf32>
    %31 = math.tanh %30 : vector<8x256xf32>
    %32 = vector.broadcast %26 : vector<8x1xf32> to vector<8x256xf32>
    %33 = arith.mulf %31, %32 : vector<8x256xf32>
    %34 = arith.addf %30, %33 : vector<8x256xf32>
    %35 = vector.extract_strided_slice %1 {offsets = [0, 9], sizes = [8, 1], strides = [1, 1]} : vector<8x11xf32> to vector<8x1xf32>
    %36 = vector.extract_strided_slice %1 {offsets = [0, 10], sizes = [8, 1], strides = [1, 1]} : vector<8x11xf32> to vector<8x1xf32>
    %37 = vector.broadcast %35 : vector<8x1xf32> to vector<8x256xf32>
    %38 = arith.mulf %34, %37 : vector<8x256xf32>
    %39 = vector.broadcast %36 : vector<8x1xf32> to vector<8x256xf32>
    %40 = arith.addf %38, %39 : vector<8x256xf32>
    %41 = arith.negf %40 : vector<8x256xf32>
    %42 = math.exp %41 : vector<8x256xf32>
    %cst = arith.constant 1.000000e+00 : f32
    %43 = vector.broadcast %cst : f32 to vector<8x256xf32>
    %44 = arith.addf %43, %42 : vector<8x256xf32>
    %45 = arith.divf %43, %44 : vector<8x256xf32>
    %c0_3 = arith.constant 0 : index
    %c0_4 = arith.constant 0 : index
    %46 = vector.load %arg4[%c0_3, %c0_4] : memref<8x256xf32, #tpu.memory_space<vmem>>, vector<8x256xf32>
    tpu.vector_store %arg4[%c0_3, %c0_4], %45 {strides = array<i32>} : memref<8x256xf32, #tpu.memory_space<vmem>>, vector<8x256xf32>,
    return
  }
  func.func @transform_0(%arg0: i32, %arg1: i32) -> (i32, i32) {
    %c0_i32 = arith.constant 0 : i32
    return %arg0, %arg1 : i32, i32
  }
  func.func @transform_1(%arg0: i32, %arg1: i32) -> (i32, i32) {
    %c0_i32 = arith.constant 0 : i32
    %c0_i32_0 = arith.constant 0 : i32
    return %arg0, %c0_i32 : i32, i32
  }
  func.func @transform_2(%arg0: i32, %arg1: i32) -> (i32, i32) {
    %c0_i32 = arith.constant 0 : i32
    return %arg0, %arg1 : i32, i32
  }
}

</mosaic_0001>

<bundles_post_ra>
// kernel: tpu_custom_call.1
= control target key start
LH: loop header
LB: loop body
LE: loop exit
PB: predicated region body
PF: predicated region fallthrough
CT: control target
= control target key end

     0   :  { %7 = vsyncpa [#allocation3], 0  ;;  %s344_s0 = inlined_call_operand.hbm [shape: f32[8,256], index: 0, kind: input, shape index: {}]   ;;  %s345_s1 = inlined_call_operand.hbm [shape: f32[8,11], index: 1, kind: input, shape index: {}]   ;;  %s346_s2 = inlined_call_operand.hbm [shape: f32[8,256], index: 2, kind: output, shape index: {}]  }
   0x1   :  { %8 = vsyncpa [#allocation6], 0 }
   0x2   :  { %9 = vsyncpa [#allocation4], 0  ;;  %s15_s11 = sshll.u32 %s344_s0, 4  ;;  %s306_s12 = smov [#allocation2]   ;;  %s16_s11 = int_to_ptr.hbm [resolvable:$true] %s15_s11 }
   0x3   :  { %s17_s13 = sshll.u32 %s306_s12, 4  ;;  %s26_s16 = sshll.u32 %s345_s1, 4  ;;  %s18_s13 = int_to_ptr.vmem [resolvable:$true] %s17_s13  ;;  %s27_s16 = int_to_ptr.hbm [resolvable:$true] %s26_s16 }
   0x4   :  { %20 = dma.hbm_to_vmem [thread:$0]  %s16_s11, 256, %s18_s13, [#allocation3]  }
   0x5   :  { %s307_s17 = smov [#allocation5]  }
   0x6   :  { %s28_s18 = sshll.u32 %s307_s17, 4  ;;  %s29_s18 = int_to_ptr.vmem [resolvable:$true] %s28_s18 }
   0x7   :  { %31 = dma.hbm_to_vmem [thread:$0]  %s27_s16, 128, %s29_s18, [#allocation6]  }
   0x8   :  { %300 = dma.done.wait [#allocation3], 256  }
   0x9   :  { %301 = vsyncadd [#allocation3], 4294967040 }
   0xa   :  { %302 = dma.done.wait [#allocation6], 128  }
   0xb   :  { %303 = vsyncadd [#allocation6], 4294967168  ;;  %v308_v0 = vmov 0   ;;  %v309_v1 = vmov 2   ;;  %v310_v2 = vmov 4   ;;  %v42_v3 = vld [vmem:[#allocation5] sm:$0xff] }
   0xc   :  { %196 = vset.pattern.permute.xlu0 %v308_v0  ;;  %198 = vset.pattern.permute.xlu1 %v309_v1  ;;  %v311_v4 = vmov 1   ;;  %v312_v5 = vmov 3   ;;  %v313_v6 = vmov 5   ;;  %v314_v7 = vmov 6   ;;  %v40_v13 = vld [vmem:[#allocation2] sm:$0xff]  ;;  %v41_v14 = vld [vmem:[#allocation2 + $0x8] sm:$0xff] }
   0xd   :  { %200 = vset.pattern.permute.xlu2 %v310_v2  ;;  %45 = vperm.xlu0 %196, %v42_v3   ;;  %v315_v8 = vmov 8   ;;  %v316_v9 = vmov 7   ;;  %v317_v10 = vmov 9   ;;  %v318_v11 = vmov 10   ;;  %s319_s0 = smov [#allocation7]   ;;  %s169_s21 = sshll.u32 %s346_s2, 4  ;;  %s170_s21 = int_to_ptr.hbm [resolvable:$true] %s169_s21 }
   0xe   :  { %59 = vperm.xlu1 %198, %v42_v3   ;;  %73 = vperm.xlu2 %200, %v42_v3   ;;  %s167_s1 = sshll.u32 %s319_s0, 4  ;;  %s168_s1 = int_to_ptr.vmem [resolvable:$true] %s167_s1 }
  0x15   :  { %197 = vset.pattern.permute.xlu0 %v311_v4 }
  0x16   :  { %199 = vset.pattern.permute.xlu1 %v312_v5  ;;  %51 = vperm.xlu0 %197, %v42_v3  }
  0x17   :  { %67 = vperm.xlu1 %199, %v42_v3   ;;  %201 = vset.pattern.permute.xlu2 %v313_v6 }
  0x18   :  { %81 = vperm.xlu2 %201, %v42_v3  }
  0x1e   :  { %204 = vset.pattern.permute.xlu0 %v315_v8 }
  0x1f   :  { %202 = vset.pattern.permute.xlu1 %v314_v7  ;;  %103 = vperm.xlu0 %204, %v42_v3  }
  0x20   :  { %89 = vperm.xlu1 %202, %v42_v3   ;;  %203 = vset.pattern.permute.xlu2 %v316_v9 }
  0x21   :  { %95 = vperm.xlu2 %203, %v42_v3  }
  0x27   :  { %207 = vset.pattern.permute.xlu0 %v318_v11 }
  0x28   :  { %205 = vset.pattern.permute.xlu1 %v317_v10 }
  0x29   :  { %111 = vperm.xlu1 %205, %v42_v3   ;;  %206 = vset.pattern.permute.xlu2 %v318_v11 }
  0x2a   :  { %117 = vperm.xlu2 %206, %v42_v3  }
  0x68   :  { %v74_v21 = vpop.permute.xlu2 %73 }
  0x72   :  { %v82_v33 = vpop.permute.xlu2 %81 }
  0x7b   :  { %v96_v41 = vpop.permute.xlu2 %95 }
  0x7f   :  { %v46_v12 = vpop.permute.xlu0 %45 }
  0x80   :  { %v48_v15 = vmul.f32 %v46_v12, %v40_v13  ;;  %v49_v16 = vmul.f32 %v46_v12, %v41_v14  ;;  %v60_v20 = vpop.permute.xlu1 %59 }
  0x84   :  { %v118_v54 = vpop.permute.xlu2 %117 }
  0x88   :  { %v52_v17 = vpop.permute.xlu0 %51 }
  0x89   :  { %v54_v18 = vadd.f32 %v52_v17, %v48_v15  ;;  %v55_v19 = vadd.f32 %v52_v17, %v49_v16  ;;  %v68_v26 = vpop.permute.xlu1 %67 }
  0x8b   :  { %208 = vtanh.f32 %v54_v18 }
  0x8c   :  { %210 = vtanh.f32 %v55_v19 }
  0x91   :  { %v209_v22 = vpop.eup %208  ;;  %v104_v46 = vpop.permute.xlu0 %103 }
  0x92   :  { %v211_v23 = vpop.eup %210  ;;  %v62_v24 = vmul.f32 %v209_v22, %v60_v20  ;;  %v90_v38 = vpop.permute.xlu1 %89 }
  0x93   :  { %v63_v25 = vmul.f32 %v211_v23, %v60_v20 }
  0x94   :  { %v64_v27 = vadd.f32 %v62_v24, %v54_v18 }
  0x95   :  { %v65_v28 = vadd.f32 %v63_v25, %v55_v19 }
  0x96   :  { %v70_v29 = vmul.f32 %v68_v26, %v64_v27 }
  0x97   :  { %v71_v30 = vmul.f32 %v68_v26, %v65_v28 }
  0x98   :  { %v76_v31 = vadd.f32 %v74_v21, %v70_v29 }
  0x99   :  { %v77_v32 = vadd.f32 %v74_v21, %v71_v30 }
  0x9a   :  { %212 = vtanh.f32 %v76_v31 }
  0x9b   :  { %214 = vtanh.f32 %v77_v32  ;;  %v112_v51 = vpop.permute.xlu1 %111 }
  0xa0   :  { %v213_v34 = vpop.eup %212 }
  0xa1   :  { %v215_v35 = vpop.eup %214  ;;  %v84_v36 = vmul.f32 %v213_v34, %v82_v33 }
  0xa2   :  { %v85_v37 = vmul.f32 %v215_v35, %v82_v33 }
  0xa3   :  { %v86_v39 = vadd.f32 %v84_v36, %v76_v31 }
  0xa4   :  { %v87_v40 = vadd.f32 %v85_v37, %v77_v32 }
  0xa5   :  { %v92_v42 = vmul.f32 %v90_v38, %v86_v39 }
  0xa6   :  { %v93_v43 = vmul.f32 %v90_v38, %v87_v40 }
  0xa7   :  { %v98_v44 = vadd.f32 %v96_v41, %v92_v42 }
  0xa8   :  { %v99_v45 = vadd.f32 %v96_v41, %v93_v43 }
  0xa9   :  { %216 = vtanh.f32 %v98_v44 }
  0xaa   :  { %218 = vtanh.f32 %v99_v45 }
  0xaf   :  { %v217_v47 = vpop.eup %216 }
  0xb0   :  { %v219_v48 = vpop.eup %218  ;;  %v106_v49 = vmul.f32 %v217_v47, %v104_v46 }
  0xb1   :  { %v107_v50 = vmul.f32 %v219_v48, %v104_v46 }
  0xb2   :  { %v108_v52 = vadd.f32 %v106_v49, %v98_v44 }
  0xb3   :  { %v109_v53 = vadd.f32 %v107_v50, %v99_v45 }
  0xb4   :  { %v114_v55 = vmul.f32 %v112_v51, %v108_v52 }
  0xb5   :  { %v115_v56 = vmul.f32 %v112_v51, %v109_v53 }
  0xb6   :  { %v120_v57 = vadd.f32 %v118_v54, %v114_v55 }
  0xb7   :  { %v121_v58 = vadd.f32 %v118_v54, %v115_v56 }
  0xb8   :  { %v180_v59 = vmul.f32 -1.442695, %v120_v57 }
  0xb9   :  { %v181_v60 = vmul.f32 -1.442695, %v121_v58 }
  0xba   :  { %220 = vpow2.f32 %v180_v59 }
  0xbb   :  { %222 = vpow2.f32 %v181_v60 }
  0xc0   :  { %v221_v61 = vpop.eup %220 }
  0xc1   :  { %v223_v62 = vpop.eup %222  ;;  %v128_v63 = vadd.f32 1.0, %v221_v61 }
  0xc2   :  { %v129_v0 = vadd.f32 1.0, %v223_v62 }
  0xc3   :  { %224 = vrcp.f32 %v128_v63  ;;  %v141_v7 = vand.u32 2147483648, %v128_v63  ;;  %v139_v9 = vand.u32 2147483647, %v128_v63  ;;  %vm135_vm2 = vweird.f32 %v128_v63 }
  0xc4   :  { %226 = vrcp.f32 %v129_v0  ;;  %v156_v10 = vand.u32 2147483648, %v129_v0  ;;  %v154_v12 = vand.u32 2147483647, %v129_v0  ;;  %vm150_vm4 = vweird.f32 %v129_v0 }
  0xc5   :  { %v142_v14 = vor.u32 1.1754944e-38, %v141_v7  ;;  %vm140_vm5 = vcmp.eq.f32.partialorder %v139_v9, 8.507059e+37 }
  0xc6   :  { %v157_v17 = vor.u32 1.1754944e-38, %v156_v10  ;;  %vm155_vm7 = vcmp.eq.f32.partialorder %v154_v12, 8.507059e+37 }
  0xc9   :  { %v225_v1 = vpop.eup %224 }
  0xca   :  { %v227_v2 = vpop.eup %226  ;;  %v131_v3 = vmul.f32 %v225_v1, %v128_v63  ;;  %vm136_vm0 = vweird.f32 %v225_v1 }
  0xcb   :  { %v146_v4 = vmul.f32 %v227_v2, %v129_v0  ;;  %vm151_vm1 = vweird.f32 %v227_v2  ;;  %vm137_vm3 = vmor %vm135_vm2, %vm136_vm0 }
  0xcc   :  { %v132_v5 = vsub.f32 1.0, %v131_v3  ;;  %vm152_vm6 = vmor %vm150_vm4, %vm151_vm1 }
  0xcd   :  { %v147_v6 = vsub.f32 1.0, %v146_v4 }
  0xce   :  { %v133_v8 = vmul.f32 %v225_v1, %v132_v5 }
  0xcf   :  { %v148_v11 = vmul.f32 %v227_v2, %v147_v6 }
  0xd0   :  { %v134_v13 = vadd.f32 %v225_v1, %v133_v8 }
  0xd1   :  { %v149_v15 = vadd.f32 %v227_v2, %v148_v11 }
  0xd2   :  { %v138_v16 = vsel %vm137_vm3, %v225_v1, %v134_v13 }
  0xd3   :  { %v143_v18 = vsel %vm140_vm5, %v142_v14, %v138_v16  ;;  %v153_v19 = vsel %vm152_vm6, %v227_v2, %v149_v15 }
  0xd4   :  { %v158_v20 = vsel %vm155_vm7, %v157_v17, %v153_v19  ;;  %160 = vst [vmem:[#allocation7] sm:$0xff] %v143_v18 }
  0xd5   :  { %161 = vst [vmem:[#allocation7 + $0x8] sm:$0xff] %v158_v20 }
  0xd6   :  { %172 = dma.vmem_to_hbm [thread:$0]  %s168_s1, 256, %s170_s21, [#allocation4]  }
  0xd7   :  { %304 = dma.done.wait [#allocation4], 256  }
  0xd8   :  { %305 = vsyncadd [#allocation4], 4294967040 }
  0xd9   :  { %177 = vsyncpa [#allocation3], 1 }
  0xda   :  { %178 = vsyncpa [#allocation6], 1 }
  0xdb   :  { %179 = vsyncpa [#allocation4], 1 }

</bundles_post_ra>
